<compile_context>
chip_gen: v6e
topology: v6e:2x2x1
jax: 0.10.0
libtpu: 0.0.40
codegen_flags: <defaults>
</compile_context>

<pallas_src>
import jax
import jax.numpy as jnp
from jax.experimental import pallas as pl
from jax.experimental.pallas import tpu as pltpu

PROJ = 64          # hidden projection width hardcoded in the PyTorch module


# --------------------------------- kernel ------------------------------------------
def video_attn_pool_kernel(x_ref, w1_ref, b1_ref, w2_ref, b2_ref, out_ref):
    bblk, t, d = x_ref.shape
    x = x_ref[...]                                           # (Bblk, T, D) f32

    # Fuse batch & frame rows for a single MXU GEMM:  (Bblk*T, D) @ (D, 64)
    x2 = x.reshape(bblk * t, d)
    h = jnp.dot(x2, w1_ref[...], preferred_element_type=jnp.float32) + b1_ref[...]
    h = jnp.maximum(h, 0.0)                                  # ReLU

    # Linear(64 -> 1) as a lane reduction on the VPU/XLU (avoids an N=1 matmul).
    e = jnp.sum(h * w2_ref[...], axis=-1, keepdims=True) + b2_ref[...]   # (Bblk*T, 1)
    e3 = e.reshape(bblk, t, 1)                               # frames back on sublanes

    # softmax over the T frames of each batch element
    m = jnp.max(e3, axis=1, keepdims=True)
    p = jnp.exp(e3 - m)
    denom = jnp.sum(p, axis=1, keepdims=True)
    w = p * pl.reciprocal(denom, approx=True)                # (Bblk, T, 1)

    # weighted sum over frames -> lane-dense (Bblk, D) output
    out_ref[...] = jnp.sum(x * w, axis=1)


# --------------------------------- wrapper ------------------------------------------
def _pick_bblk(batch, frames, target_rows=256):
    """Largest divisor of `batch` whose fused GEMM M-dim (<= target_rows) fits.
    target_rows=256 saturates the v6e/v7x MXU; use 128 on v5e."""
    bblk = max(1, min(batch, max(1, target_rows // frames)))
    while batch % bblk:
        bblk -= 1
    return bblk


def video_attention_pooling(inputs, params, target_rows=256):
    B, T, D = inputs.shape
    bblk = _pick_bblk(B, T, target_rows)
    const2d = lambda shape: pl.BlockSpec(shape, lambda i: (0, 0))
    return pl.pallas_call(
        video_attn_pool_kernel,
        out_shape=jax.ShapeDtypeStruct((B, D), jnp.float32),
        grid=(B // bblk,),
        in_specs=[
            pl.BlockSpec((bblk, T, D), lambda i: (i, 0, 0)),   # inputs block
            const2d((D, PROJ)),                                # w1  (hidden -> 64)
            const2d((1, PROJ)),                                # b1
            const2d((1, PROJ)),                                # w2  (row of Linear(64,1).weight)
            const2d((1, 1)),                                   # b2
        ],
        out_specs=pl.BlockSpec((bblk, D), lambda i: (i, 0)),
        compiler_params=pltpu.CompilerParams(
            dimension_semantics=("parallel",),                 # batch steps independent
            vmem_limit_bytes=48 * 1024 * 1024),                # safe on v7x (64 MiB VMEM)
    )(inputs, params["w1"], params["b1"], params["w2"], params["b2"])


# ----------------------------- pure-JAX reference -----------------------------------
def _ref_forward(x, p):
    h = jnp.maximum(jnp.einsum("btd,dk->btk", x, p["w1"]) + p["b1"], 0.0)
    energy = jnp.einsum("btk,k->bt", h, p["w2"][0]) + p["b2"][0, 0]
    w = jax.nn.softmax(energy, axis=1)
    return jnp.sum(x * w[..., None], axis=1)


# ------------------------------------ main -------------------------------------------
if __name__ == "__main__":
    B, T, HID = 8, 8, 512                                   # small video-feature shapes
    key = jax.random.PRNGKey(0)
    kx, k1, kb1, k2, kb2 = jax.random.split(key, 5)
    x = jax.random.normal(kx, (B, T, HID), jnp.float32)
    params = dict(
        # w1 stored as (hidden, 64) == PyTorch Linear(hidden, 64).weight.T
        w1=(0.05 * jax.random.normal(k1, (HID, PROJ))).astype(jnp.float32),
        b1=(0.05 * jax.random.normal(kb1, (1, PROJ))).astype(jnp.float32),
        # w2 stored as (1, 64)      == PyTorch Linear(64, 1).weight
        w2=(0.05 * jax.random.normal(k2, (1, PROJ))).astype(jnp.float32),
        b2=(0.05 * jax.random.normal(kb2, (1, 1))).astype(jnp.float32),
    )

    out = video_attention_pooling(x, params)
    out = jax.block_until_ready(out)

    ref = _ref_forward(x, params)
    err = float(jnp.max(jnp.abs(out - ref)))
    assert out.shape == (B, HID)
    assert jnp.allclose(out, ref, atol=2e-3, rtol=2e-3), f"max abs err {err}"

    print("KERNEL_OK")
</pallas_src>

<mosaic_0001>
module attributes {stable_mosaic.version = 11 : i64} {
  func.func @video_attn_pool_kernel(%arg0: i32, %arg1: memref<8x8x512xf32, #tpu.memory_space<vmem>>, %arg2: memref<512x64xf32, #tpu.memory_space<vmem>>, %arg3: memref<1x64xf32, #tpu.memory_space<vmem>>, %arg4: memref<1x64xf32, #tpu.memory_space<vmem>>, %arg5: memref<1x1xf32, #tpu.memory_space<vmem>>, %arg6: memref<8x512xf32, #tpu.memory_space<vmem>>) attributes {dimension_semantics = [#tpu.dimension_semantics<parallel>], iteration_bounds = array<i64: 1>, scalar_prefetch = 0 : i64, scratch_operands = 0 : i64, tpu.core_type = #tpu.core_type<tc>, window_params = [{transform_indices = @transform_0, window_bounds = array<i64: 8, 8, 512>}, {pipeline_mode = #tpu.pipeline_mode<synchronous>, transform_indices = @transform_1, window_bounds = array<i64: 512, 64>}, {pipeline_mode = #tpu.pipeline_mode<synchronous>, transform_indices = @transform_2, window_bounds = array<i64: 1, 64>}, {pipeline_mode = #tpu.pipeline_mode<synchronous>, transform_indices = @transform_3, window_bounds = array<i64: 1, 64>}, {pipeline_mode = #tpu.pipeline_mode<synchronous>, transform_indices = @transform_4, window_bounds = array<i64: 1, 1>}, {transform_indices = @transform_5, window_bounds = array<i64: 8, 512>}]} {
    %c0 = arith.constant 0 : index
    %c0_0 = arith.constant 0 : index
    %c0_1 = arith.constant 0 : index
    %0 = vector.load %arg1[%c0, %c0_0, %c0_1] : memref<8x8x512xf32, #tpu.memory_space<vmem>>, vector<8x8x512xf32>
    %1 = vector.shape_cast %0 : vector<8x8x512xf32> to vector<64x512xf32>
    %c0_2 = arith.constant 0 : index
    %c0_3 = arith.constant 0 : index
    %2 = vector.load %arg2[%c0_2, %c0_3] : memref<512x64xf32, #tpu.memory_space<vmem>>, vector<512x64xf32>
    %cst = arith.constant dense<0.000000e+00> : vector<64x64xf32>
    %3 = tpu.matmul %1, %2, %cst {dimension_numbers = #tpu.dot_dimension_numbers<[1], [0], [0], [1], [0, 0, 1, 1], [], []>} : vector<64x512xf32>, vector<512x64xf32>, vector<64x64xf32> -> vector<64x64xf32>
    %c0_4 = arith.constant 0 : index
    %c0_5 = arith.constant 0 : index
    %4 = vector.load %arg3[%c0_4, %c0_5] : memref<1x64xf32, #tpu.memory_space<vmem>>, vector<1x64xf32>
    %5 = vector.broadcast %4 : vector<1x64xf32> to vector<64x64xf32>
    %6 = arith.addf %3, %5 : vector<64x64xf32>
    %cst_6 = arith.constant 0.000000e+00 : f32
    %7 = vector.broadcast %cst_6 : f32 to vector<64x64xf32>
    %8 = arith.maximumf %6, %7 : vector<64x64xf32>
    %c0_7 = arith.constant 0 : index
    %c0_8 = arith.constant 0 : index
    %9 = vector.load %arg4[%c0_7, %c0_8] : memref<1x64xf32, #tpu.memory_space<vmem>>, vector<1x64xf32>
    %10 = vector.broadcast %9 : vector<1x64xf32> to vector<64x64xf32>
    %11 = arith.mulf %8, %10 : vector<64x64xf32>
    %cst_9 = arith.constant dense<0.000000e+00> : vector<64xf32>
    %12 = vector.multi_reduction <add>, %11, %cst_9 [1] : vector<64x64xf32> to vector<64xf32>
    %13 = vector.shape_cast %12 : vector<64xf32> to vector<64x1xf32>
    %c0_10 = arith.constant 0 : index
    %c0_11 = arith.constant 0 : index
    %14 = vector.load %arg5[%c0_10, %c0_11] : memref<1x1xf32, #tpu.memory_space<vmem>>, vector<1x1xf32>
    %15 = vector.broadcast %14 : vector<1x1xf32> to vector<64x1xf32>
    %16 = arith.addf %13, %15 : vector<64x1xf32>
    %17 = vector.shape_cast %16 : vector<64x1xf32> to vector<8x8x1xf32>
    %cst_12 = arith.constant dense<0xFF800000> : vector<8x1xf32>
    %18 = vector.multi_reduction <maximumf>, %17, %cst_12 [1] : vector<8x8x1xf32> to vector<8x1xf32>
    %19 = vector.shape_cast %18 : vector<8x1xf32> to vector<8x1x1xf32>
    %20 = vector.broadcast %19 : vector<8x1x1xf32> to vector<8x8x1xf32>
    %21 = arith.subf %17, %20 : vector<8x8x1xf32>
    %22 = math.exp %21 : vector<8x8x1xf32>
    %cst_13 = arith.constant dense<0.000000e+00> : vector<8x1xf32>
    %23 = vector.multi_reduction <add>, %22, %cst_13 [1] : vector<8x8x1xf32> to vector<8x1xf32>
    %24 = vector.shape_cast %23 : vector<8x1xf32> to vector<8x1x1xf32>
    %25 = tpu.reciprocal %24 {approx = true} : vector<8x1x1xf32> -> vector<8x1x1xf32>
    %26 = vector.broadcast %25 : vector<8x1x1xf32> to vector<8x8x1xf32>
    %27 = arith.mulf %22, %26 : vector<8x8x1xf32>
    %28 = vector.broadcast %27 : vector<8x8x1xf32> to vector<8x8x512xf32>
    %29 = arith.mulf %0, %28 : vector<8x8x512xf32>
    %cst_14 = arith.constant dense<0.000000e+00> : vector<8x512xf32>
    %30 = vector.multi_reduction <add>, %29, %cst_14 [1] : vector<8x8x512xf32> to vector<8x512xf32>
    %c0_15 = arith.constant 0 : index
    %c0_16 = arith.constant 0 : index
    %31 = vector.load %arg6[%c0_15, %c0_16] : memref<8x512xf32, #tpu.memory_space<vmem>>, vector<8x512xf32>
    tpu.vector_store %arg6[%c0_15, %c0_16], %30 {strides = array<i32>} : memref<8x512xf32, #tpu.memory_space<vmem>>, vector<8x512xf32>,
    return
  }
  func.func @transform_0(%arg0: i32) -> (i32, i32, i32) {
    %c0_i32 = arith.constant 0 : i32
    %c0_i32_0 = arith.constant 0 : i32
    %c0_i32_1 = arith.constant 0 : i32
    return %arg0, %c0_i32, %c0_i32_0 : i32, i32, i32
  }
  func.func @transform_1(%arg0: i32) -> (i32, i32) {
    %c0_i32 = arith.constant 0 : i32
    %c0_i32_0 = arith.constant 0 : i32
    %c0_i32_1 = arith.constant 0 : i32
    return %c0_i32, %c0_i32_0 : i32, i32
  }
  func.func @transform_2(%arg0: i32) -> (i32, i32) {
    %c0_i32 = arith.constant 0 : i32
    %c0_i32_0 = arith.constant 0 : i32
    %c0_i32_1 = arith.constant 0 : i32
    return %c0_i32, %c0_i32_0 : i32, i32
  }
  func.func @transform_3(%arg0: i32) -> (i32, i32) {
    %c0_i32 = arith.constant 0 : i32
    %c0_i32_0 = arith.constant 0 : i32
    %c0_i32_1 = arith.constant 0 : i32
    return %c0_i32, %c0_i32_0 : i32, i32
  }
  func.func @transform_4(%arg0: i32) -> (i32, i32) {
    %c0_i32 = arith.constant 0 : i32
    %c0_i32_0 = arith.constant 0 : i32
    %c0_i32_1 = arith.constant 0 : i32
    return %c0_i32, %c0_i32_0 : i32, i32
  }
  func.func @transform_5(%arg0: i32) -> (i32, i32) {
    %c0_i32 = arith.constant 0 : i32
    %c0_i32_0 = arith.constant 0 : i32
    return %arg0, %c0_i32 : i32, i32
  }
}

</mosaic_0001>

<bundles_post_ra>
// kernel: tpu_custom_call.1
= control target key start
LH: loop header
LB: loop body
LE: loop exit
PB: predicated region body
PF: predicated region fallthrough
CT: control target
= control target key end

     0   :  { %s1648_s0 = inlined_call_operand.vmem [shape: f32[8,8,512], index: 0, kind: input, shape index: {}]   ;;  %s1649_s1 = inlined_call_operand.vmem [shape: f32[512,64], index: 1, kind: input, shape index: {}]   ;;  %s1650_s2 = inlined_call_operand.vmem [shape: f32[1,64], index: 2, kind: input, shape index: {}]   ;;  %s1651_s3 = inlined_call_operand.vmem [shape: f32[1,64], index: 3, kind: input, shape index: {}]   ;;  %s1652_s4 = inlined_call_operand.<no memory space> [shape: f32[1,1], index: 4, kind: input, shape index: {}]   ;;  %s1653_s5 = inlined_call_operand.hbm [shape: f32[8,512], index: 5, kind: output, shape index: {}]  }
   0x1   :  { %v10_v0 = vstv %s1652_s4 }
   0x2   :  { %11 = vst [vmem:[#allocation2] sm:$0x1] %v10_v0 }
   0x3   :  { %v86_v1 = vld [vmem:[%s1649_s1 + $0xf8] sm:$0xff]  ;;  %v85_v5 = vld [vmem:[%s1649_s1 + $0xf0] sm:$0xff]  ;;  %v84_v9 = vld [vmem:[%s1649_s1 + $0xe8] sm:$0xff] }
   0x4   :  { %v118_v2 = vld [vmem:[%s1649_s1 + $0x1f8] sm:$0xff]  ;;  %908 = vmatprep.subr.mxu0 %v86_v1  ;;  %v117_v6 = vld [vmem:[%s1649_s1 + $0x1f0] sm:$0xff]  ;;  %v116_v10 = vld [vmem:[%s1649_s1 + $0x1e8] sm:$0xff] }
   0x5   :  { %v70_v3 = vld [vmem:[%s1649_s1 + $0x78] sm:$0xff]  ;;  %964 = vmatprep.subr.mxu1 %v118_v2  ;;  %v69_v7 = vld [vmem:[%s1649_s1 + $0x70] sm:$0xff]  ;;  %v68_v11 = vld [vmem:[%s1649_s1 + $0x68] sm:$0xff] }
   0x6   :  { %v102_v4 = vld [vmem:[%s1649_s1 + $0x178] sm:$0xff]  ;;  %909 = vmatpush3.msra.mxu0 %v70_v3  ;;  %v101_v8 = vld [vmem:[%s1649_s1 + $0x170] sm:$0xff]  ;;  %v100_v12 = vld [vmem:[%s1649_s1 + $0x168] sm:$0xff] }
   0x7   :  { %965 = vmatpush3.msra.mxu1 %v102_v4  ;;  %910 = vmatprep.subr.mxu0 %v85_v5  ;;  %v83_v13 = vld [vmem:[%s1649_s1 + $0xe0] sm:$0xff]  ;;  %v82_v17 = vld [vmem:[%s1649_s1 + $0xd8] sm:$0xff]  ;;  %v81_v21 = vld [vmem:[%s1649_s1 + $0xd0] sm:$0xff] }
   0x8   :  { %966 = vmatprep.subr.mxu1 %v117_v6  ;;  %911 = vmatpush3.msra.mxu0 %v69_v7  ;;  %v115_v14 = vld [vmem:[%s1649_s1 + $0x1e0] sm:$0xff]  ;;  %v114_v18 = vld [vmem:[%s1649_s1 + $0x1d8] sm:$0xff]  ;;  %v113_v22 = vld [vmem:[%s1649_s1 + $0x1d0] sm:$0xff] }
   0x9   :  { %967 = vmatpush3.msra.mxu1 %v101_v8  ;;  %912 = vmatprep.subr.mxu0 %v84_v9  ;;  %v67_v15 = vld [vmem:[%s1649_s1 + $0x60] sm:$0xff]  ;;  %v66_v19 = vld [vmem:[%s1649_s1 + $0x58] sm:$0xff]  ;;  %v65_v23 = vld [vmem:[%s1649_s1 + $0x50] sm:$0xff] }
   0xa   :  { %968 = vmatprep.subr.mxu1 %v116_v10  ;;  %v99_v16 = vld [vmem:[%s1649_s1 + $0x160] sm:$0xff]  ;;  %913 = vmatpush3.msra.mxu0 %v68_v11  ;;  %v98_v20 = vld [vmem:[%s1649_s1 + $0x158] sm:$0xff]  ;;  %v97_v24 = vld [vmem:[%s1649_s1 + $0x150] sm:$0xff] }
   0xb   :  { %969 = vmatpush3.msra.mxu1 %v100_v12  ;;  %914 = vmatprep.subr.mxu0 %v83_v13  ;;  %v80_v25 = vld [vmem:[%s1649_s1 + $0xc8] sm:$0xff]  ;;  %v79_v29 = vld [vmem:[%s1649_s1 + $0xc0] sm:$0xff]  ;;  %v78_v33 = vld [vmem:[%s1649_s1 + $0xb8] sm:$0xff] }
   0xc   :  { %970 = vmatprep.subr.mxu1 %v115_v14  ;;  %915 = vmatpush3.msra.mxu0 %v67_v15  ;;  %v112_v26 = vld [vmem:[%s1649_s1 + $0x1c8] sm:$0xff]  ;;  %v111_v30 = vld [vmem:[%s1649_s1 + $0x1c0] sm:$0xff]  ;;  %v110_v34 = vld [vmem:[%s1649_s1 + $0x1b8] sm:$0xff] }
   0xd   :  { %971 = vmatpush3.msra.mxu1 %v99_v16  ;;  %916 = vmatprep.subr.mxu0 %v82_v17  ;;  %v64_v27 = vld [vmem:[%s1649_s1 + $0x48] sm:$0xff]  ;;  %v63_v31 = vld [vmem:[%s1649_s1 + $0x40] sm:$0xff]  ;;  %v62_v35 = vld [vmem:[%s1649_s1 + $0x38] sm:$0xff] }
   0xe   :  { %972 = vmatprep.subr.mxu1 %v114_v18  ;;  %917 = vmatpush3.msra.mxu0 %v66_v19  ;;  %v96_v28 = vld [vmem:[%s1649_s1 + $0x148] sm:$0xff]  ;;  %v95_v32 = vld [vmem:[%s1649_s1 + $0x140] sm:$0xff]  ;;  %v94_v36 = vld [vmem:[%s1649_s1 + $0x138] sm:$0xff] }
   0xf   :  { %973 = vmatpush3.msra.mxu1 %v98_v20  ;;  %918 = vmatprep.subr.mxu0 %v81_v21  ;;  %v77_v37 = vld [vmem:[%s1649_s1 + $0xb0] sm:$0xff]  ;;  %v76_v41 = vld [vmem:[%s1649_s1 + $0xa8] sm:$0xff]  ;;  %v75_v45 = vld [vmem:[%s1649_s1 + $0xa0] sm:$0xff] }
  0x10   :  { %974 = vmatprep.subr.mxu1 %v113_v22  ;;  %919 = vmatpush3.msra.mxu0 %v65_v23  ;;  %v109_v38 = vld [vmem:[%s1649_s1 + $0x1b0] sm:$0xff]  ;;  %v108_v42 = vld [vmem:[%s1649_s1 + $0x1a8] sm:$0xff]  ;;  %v107_v46 = vld [vmem:[%s1649_s1 + $0x1a0] sm:$0xff] }
  0x11   :  { %975 = vmatpush3.msra.mxu1 %v97_v24  ;;  %920 = vmatprep.subr.mxu0 %v80_v25  ;;  %v61_v39 = vld [vmem:[%s1649_s1 + $0x30] sm:$0xff]  ;;  %v60_v43 = vld [vmem:[%s1649_s1 + $0x28] sm:$0xff]  ;;  %v59_v47 = vld [vmem:[%s1649_s1 + $0x20] sm:$0xff] }
  0x12   :  { %976 = vmatprep.subr.mxu1 %v112_v26  ;;  %921 = vmatpush3.msra.mxu0 %v64_v27  ;;  %v93_v40 = vld [vmem:[%s1649_s1 + $0x130] sm:$0xff]  ;;  %v92_v44 = vld [vmem:[%s1649_s1 + $0x128] sm:$0xff]  ;;  %v91_v48 = vld [vmem:[%s1649_s1 + $0x120] sm:$0xff] }
  0x13   :  { %977 = vmatpush3.msra.mxu1 %v96_v28  ;;  %922 = vmatprep.subr.mxu0 %v79_v29  ;;  %v74_v49 = vld [vmem:[%s1649_s1 + $0x98] sm:$0xff]  ;;  %v73_v53 = vld [vmem:[%s1649_s1 + $0x90] sm:$0xff]  ;;  %v72_v57 = vld [vmem:[%s1649_s1 + $0x88] sm:$0xff] }
  0x14   :  { %978 = vmatprep.subr.mxu1 %v111_v30  ;;  %923 = vmatpush3.msra.mxu0 %v63_v31  ;;  %v106_v50 = vld [vmem:[%s1649_s1 + $0x198] sm:$0xff]  ;;  %v105_v54 = vld [vmem:[%s1649_s1 + $0x190] sm:$0xff]  ;;  %v104_v58 = vld [vmem:[%s1649_s1 + $0x188] sm:$0xff] }
  0x15   :  { %979 = vmatpush3.msra.mxu1 %v95_v32  ;;  %924 = vmatprep.subr.mxu0 %v78_v33  ;;  %v58_v51 = vld [vmem:[%s1649_s1 + $0x18] sm:$0xff]  ;;  %v57_v55 = vld [vmem:[%s1649_s1 + $0x10] sm:$0xff]  ;;  %v56_v59 = vld [vmem:[%s1649_s1 + $0x8] sm:$0xff] }
  0x16   :  { %980 = vmatprep.subr.mxu1 %v110_v34  ;;  %925 = vmatpush3.msra.mxu0 %v62_v35  ;;  %v90_v52 = vld [vmem:[%s1649_s1 + $0x118] sm:$0xff]  ;;  %v89_v56 = vld [vmem:[%s1649_s1 + $0x110] sm:$0xff]  ;;  %v88_v60 = vld [vmem:[%s1649_s1 + $0x108] sm:$0xff] }
  0x17   :  { %981 = vmatpush3.msra.mxu1 %v94_v36  ;;  %926 = vmatprep.subr.mxu0 %v77_v37  ;;  %v71_v61 = vld [vmem:[%s1649_s1 + $0x80] sm:$0xff]  ;;  %v1306_v0 = vld [vmem:[%s1648_s0 + $0x8] sm:$0xff]  ;;  %v1314_v2 = vld [vmem:[%s1648_s0 + $0x18] sm:$0xff] }
  0x18   :  { %982 = vmatprep.subr.mxu1 %v109_v38  ;;  %927 = vmatpush3.msra.mxu0 %v61_v39  ;;  %v103_v62 = vld [vmem:[%s1649_s1 + $0x180] sm:$0xff]  ;;  %v1324_v4 = vld [vmem:[%s1648_s0 + $0x10] sm:$0xff]  ;;  %v1330_v5 = vld [vmem:[%s1648_s0 + $0x28] sm:$0xff] }
  0x19   :  { %983 = vmatpush3.msra.mxu1 %v93_v40  ;;  %928 = vmatprep.subr.mxu0 %v76_v41  ;;  %v55_v63 = vld [vmem:[%s1649_s1] sm:$0xff]  ;;  %v1335_v6 = vld [vmem:[%s1648_s0 + $0x38] sm:$0xff] }
  0x1a   :  { %984 = vmatprep.subr.mxu1 %v108_v42  ;;  %929 = vmatpush3.msra.mxu0 %v60_v43  ;;  %v87_v1 = vld [vmem:[%s1649_s1 + $0x100] sm:$0xff] }
  0x1b   :  { %985 = vmatpush3.msra.mxu1 %v92_v44  ;;  %930 = vmatprep.subr.mxu0 %v75_v45  ;;  %v1319_v3 = vld [vmem:[%s1648_s0] sm:$0xff] }
  0x1c   :  { %986 = vmatprep.subr.mxu1 %v107_v46  ;;  %931 = vmatpush3.msra.mxu0 %v59_v47 }
  0x1d   :  { %987 = vmatpush3.msra.mxu1 %v91_v48  ;;  %932 = vmatprep.subr.mxu0 %v74_v49 }
  0x1e   :  { %988 = vmatprep.subr.mxu1 %v106_v50  ;;  %933 = vmatpush3.msra.mxu0 %v58_v51 }
  0x1f   :  { %989 = vmatpush3.msra.mxu1 %v90_v52  ;;  %934 = vmatprep.subr.mxu0 %v73_v53 }
  0x20   :  { %990 = vmatprep.subr.mxu1 %v105_v54  ;;  %935 = vmatpush3.msra.mxu0 %v57_v55 }
  0x21   :  { %991 = vmatpush3.msra.mxu1 %v89_v56  ;;  %936 = vmatprep.subr.mxu0 %v72_v57 }
  0x22   :  { %992 = vmatprep.subr.mxu1 %v104_v58  ;;  %937 = vmatpush3.msra.mxu0 %v56_v59 }
  0x23   :  { %993 = vmatpush3.msra.mxu1 %v88_v60  ;;  %938 = vmatprep.subr.mxu0 %v71_v61 }
  0x24   :  { %994 = vmatprep.subr.mxu1 %v103_v62  ;;  %939 = vmatpush3.msra.mxu0 %v55_v63 }
  0x25   :  { %190 = vmatprep.mubr.f32.mxu0 %v1306_v0 }
  0x26   :  { %12 = vsyncpa [#allocation4], 0  ;;  %995 = vmatpush3.msra.mxu1 %v87_v1  ;;  %295 = vmatprep.mubr.f32.mxu1 %v1314_v2  ;;  %v1345_v7 = vld [vmem:[%s1648_s0 + $0x20] sm:$0xff]  ;;  %v1350_v8 = vld [vmem:[%s1648_s0 + $0x30] sm:$0xff]  ;;  %vm359_vm0 = vcmask 523264   ;;  %vm399_vm1 = vcmask 7168  }
  0x27   :  { %191 = vmatmul.mubr.f32.vlgmr.msra.gmra.mxu0 %v1319_v3  ;;  %296 = vmatmul.mubr.f32.vlgmr.msra.gmra.mxu1 %v1324_v4  ;;  %v1355_v9 = vld [vmem:[%s1648_s0 + $0x48] sm:$0xff]  ;;  %v1360_v10 = vld [vmem:[%s1648_s0 + $0x58] sm:$0xff]  ;;  %v1369_v11 = vld [vmem:[%s1648_s0 + $0x40] sm:$0xff]  ;;  %vm848_vm2 = vcmask 1041409   ;;  %vm850_vm3 = vcmask 1042434   ;;  %vm852_vm4 = vcmask 1043459  }
  0x28   :  { %195 = vmatprep.mubr.f32.mxu0 %v1330_v5  ;;  %300 = vmatprep.mubr.f32.mxu1 %v1335_v6  ;;  %v1374_v12 = vld [vmem:[%s1648_s0 + $0x50] sm:$0xff]  ;;  %v1379_v13 = vld [vmem:[%s1648_s0 + $0x68] sm:$0xff]  ;;  %v1384_v14 = vld [vmem:[%s1648_s0 + $0x78] sm:$0xff]  ;;  %vm854_vm5 = vcmask 1044484   ;;  %vm856_vm6 = vcmask 1045509   ;;  %vm858_vm7 = vcmask 1046534  }
  0x29   :  { %v1393_v15 = vld [vmem:[%s1648_s0 + $0x60] sm:$0xff]  ;;  %v1398_v16 = vld [vmem:[%s1648_s0 + $0x70] sm:$0xff]  ;;  %v1403_v17 = vld [vmem:[%s1648_s0 + $0x88] sm:$0xff]  ;;  %vm860_vm8 = vcmask 1047559  }
  0x2a   :  { %v1408_v18 = vld [vmem:[%s1648_s0 + $0x98] sm:$0xff]  ;;  %v1417_v19 = vld [vmem:[%s1648_s0 + $0x80] sm:$0xff]  ;;  %v1422_v20 = vld [vmem:[%s1648_s0 + $0x90] sm:$0xff] }
  0x2b   :  { %196 = vmatmul.mubr.f32.gmra.mxu0 %v1345_v7  ;;  %301 = vmatmul.mubr.f32.gmra.mxu1 %v1350_v8  ;;  %v1427_v21 = vld [vmem:[%s1648_s0 + $0xa8] sm:$0xff]  ;;  %v1432_v22 = vld [vmem:[%s1648_s0 + $0xb8] sm:$0xff]  ;;  %v1441_v23 = vld [vmem:[%s1648_s0 + $0xa0] sm:$0xff] }
  0x2c   :  { %200 = vmatprep.mubr.f32.mxu0 %v1355_v9  ;;  %305 = vmatprep.mubr.f32.mxu1 %v1360_v10  ;;  %v1446_v24 = vld [vmem:[%s1648_s0 + $0xb0] sm:$0xff]  ;;  %v1451_v25 = vld [vmem:[%s1648_s0 + $0xc8] sm:$0xff]  ;;  %v1456_v26 = vld [vmem:[%s1648_s0 + $0xd8] sm:$0xff] }
  0x2d   :  { %v1465_v27 = vld [vmem:[%s1648_s0 + $0xc0] sm:$0xff]  ;;  %v1470_v28 = vld [vmem:[%s1648_s0 + $0xd0] sm:$0xff]  ;;  %v1475_v29 = vld [vmem:[%s1648_s0 + $0xe8] sm:$0xff] }
  0x2e   :  { %v54_v30 = vld [vmem:[%s1648_s0 + $0xf8] sm:$0xff]  ;;  %v1486_v31 = vld [vmem:[%s1648_s0 + $0xe0] sm:$0xff]  ;;  %v1491_v32 = vld [vmem:[%s1648_s0 + $0xf0] sm:$0xff] }
  0x2f   :  { %201 = vmatmul.mubr.f32.gmra.mxu0 %v1369_v11  ;;  %306 = vmatmul.mubr.f32.gmra.mxu1 %v1374_v12  ;;  %v1498_v35 = vld [vmem:[%s1650_s2] ss:$0 sm:$0xff] }
  0x30   :  { %205 = vmatprep.mubr.f32.mxu0 %v1379_v13  ;;  %310 = vmatprep.mubr.f32.mxu1 %v1384_v14  ;;  %v1504_v49 = vld [vmem:[%s1651_s3] ss:$0 sm:$0xff] }
  0x33   :  { %206 = vmatmul.mubr.f32.gmra.mxu0 %v1393_v15  ;;  %311 = vmatmul.mubr.f32.gmra.mxu1 %v1398_v16 }
  0x34   :  { %210 = vmatprep.mubr.f32.mxu0 %v1403_v17  ;;  %315 = vmatprep.mubr.f32.mxu1 %v1408_v18 }
  0x37   :  { %211 = vmatmul.mubr.f32.gmra.mxu0 %v1417_v19  ;;  %316 = vmatmul.mubr.f32.gmra.mxu1 %v1422_v20 }
  0x38   :  { %215 = vmatprep.mubr.f32.mxu0 %v1427_v21  ;;  %320 = vmatprep.mubr.f32.mxu1 %v1432_v22 }
  0x3b   :  { %216 = vmatmul.mubr.f32.gmra.mxu0 %v1441_v23  ;;  %321 = vmatmul.mubr.f32.gmra.mxu1 %v1446_v24 }
  0x3c   :  { %220 = vmatprep.mubr.f32.mxu0 %v1451_v25  ;;  %325 = vmatprep.mubr.f32.mxu1 %v1456_v26 }
  0x3f   :  { %221 = vmatmul.mubr.f32.gmra.mxu0 %v1465_v27  ;;  %326 = vmatmul.mubr.f32.gmra.mxu1 %v1470_v28 }
  0x40   :  { %225 = vmatprep.mubr.f32.mxu0 %v1475_v29  ;;  %330 = vmatprep.mubr.f32.mxu1 %v54_v30 }
  0x43   :  { %226 = vmatmul.mubr.f32.gmra.mxu0 %v1486_v31  ;;  %331 = vmatmul.mubr.f32.gmra.mxu1 %v1491_v32 }
  0xe7   :  { %v940_v33 = vpop.f32.mrf.mxu0  ;;  %v996_v34 = vpop.f32.mrf.mxu1 }
  0xe9   :  { %v941_v36 = vpop.f32.mrf.mxu0  ;;  %v997_v37 = vpop.f32.mrf.mxu1 }
  0xea   :  { %v942_v38 = vadd.f32 %v941_v36, %v940_v33  ;;  %v998_v42 = vadd.f32 %v997_v37, %v996_v34 }
  0xeb   :  { %v943_v39 = vpop.f32.mrf.mxu0  ;;  %v999_v40 = vpop.f32.mrf.mxu1 }
  0xec   :  { %v193_v41 = vadd.f32 %v942_v38, %v1498_v35 }
  0xed   :  { %v944_v43 = vpop.f32.mrf.mxu0  ;;  %v1000_v44 = vpop.f32.mrf.mxu1 }
  0xee   :  { %v298_v45 = vadd.f32 %v998_v42, %v193_v41  ;;  %v945_v46 = vadd.f32 %v944_v43, %v943_v39  ;;  %v1001_v52 = vadd.f32 %v1000_v44, %v999_v40 }
  0xef   :  { %v946_v47 = vpop.f32.mrf.mxu0  ;;  %v1002_v48 = vpop.f32.mrf.mxu1 }
  0xf0   :  { %v336_v50 = vmax.f32 %v298_v45, 0.0  ;;  %v198_v51 = vadd.f32 %v945_v46, %v1498_v35 }
  0xf1   :  { %v947_v53 = vpop.f32.mrf.mxu0  ;;  %v1003_v54 = vpop.f32.mrf.mxu1 }
  0xf2   :  { %v303_v55 = vadd.f32 %v1001_v52, %v198_v51  ;;  %v948_v56 = vadd.f32 %v947_v53, %v946_v47  ;;  %v351_v57 = vmul.f32 %v1504_v49, %v336_v50  ;;  %v1004_v62 = vadd.f32 %v1003_v54, %v1002_v48 }
  0xf3   :  { %v949_v58 = vpop.f32.mrf.mxu0  ;;  %v1005_v59 = vpop.f32.mrf.mxu1 }
  0xf4   :  { %v337_v60 = vmax.f32 %v303_v55, 0.0  ;;  %v203_v61 = vadd.f32 %v948_v56, %v1498_v35  ;;  %v360_v63 = vsel %vm359_vm0, %v351_v57, 0.0 }
  0xf5   :  { %v950_v1 = vpop.f32.mrf.mxu0  ;;  %v1006_v30 = vpop.f32.mrf.mxu1  ;;  %361 = vadd.xlane.f32.xlu0 %v360_v63 }
  0xf6   :  { %v308_v33 = vadd.f32 %v1004_v62, %v203_v61  ;;  %v951_v34 = vadd.f32 %v950_v1, %v949_v58  ;;  %v352_v36 = vmul.f32 %v1504_v49, %v337_v60  ;;  %v1007_v41 = vadd.f32 %v1006_v30, %v1005_v59 }
  0xf7   :  { %v952_v37 = vpop.f32.mrf.mxu0  ;;  %v1008_v38 = vpop.f32.mrf.mxu1 }
  0xf8   :  { %v338_v39 = vmax.f32 %v308_v33, 0.0  ;;  %v208_v40 = vadd.f32 %v951_v34, %v1498_v35  ;;  %v363_v42 = vsel %vm359_vm0, %v352_v36, 0.0 }
  0xf9   :  { %v953_v43 = vpop.f32.mrf.mxu0  ;;  %v1009_v44 = vpop.f32.mrf.mxu1  ;;  %364 = vadd.xlane.f32.xlu0 %v363_v42 }
  0xfa   :  { %v313_v45 = vadd.f32 %v1007_v41, %v208_v40  ;;  %v954_v46 = vadd.f32 %v953_v43, %v952_v37  ;;  %v353_v47 = vmul.f32 %v1504_v49, %v338_v39  ;;  %v1010_v53 = vadd.f32 %v1009_v44, %v1008_v38 }
  0xfb   :  { %v955_v48 = vpop.f32.mrf.mxu0  ;;  %v1011_v50 = vpop.f32.mrf.mxu1 }
  0xfc   :  { %v339_v51 = vmax.f32 %v313_v45, 0.0  ;;  %v213_v52 = vadd.f32 %v954_v46, %v1498_v35  ;;  %v366_v54 = vsel %vm359_vm0, %v353_v47, 0.0 }
  0xfd   :  { %v956_v55 = vpop.f32.mrf.mxu0  ;;  %v1012_v56 = vpop.f32.mrf.mxu1  ;;  %367 = vadd.xlane.f32.xlu1 %v366_v54 }
  0xfe   :  { %v318_v57 = vadd.f32 %v1010_v53, %v213_v52  ;;  %v957_v58 = vadd.f32 %v956_v55, %v955_v48  ;;  %v354_v59 = vmul.f32 %v1504_v49, %v339_v51  ;;  %v1013_v1 = vadd.f32 %v1012_v56, %v1011_v50 }
  0xff   :  { %v958_v60 = vpop.f32.mrf.mxu0  ;;  %v1014_v61 = vpop.f32.mrf.mxu1 }
 0x100   :  { %v340_v62 = vmax.f32 %v318_v57, 0.0  ;;  %v218_v63 = vadd.f32 %v957_v58, %v1498_v35  ;;  %v369_v30 = vsel %vm359_vm0, %v354_v59, 0.0 }
 0x101   :  { %v959_v33 = vpop.f32.mrf.mxu0  ;;  %v1015_v34 = vpop.f32.mrf.mxu1  ;;  %370 = vadd.xlane.f32.xlu1 %v369_v30 }
 0x102   :  { %v323_v36 = vadd.f32 %v1013_v1, %v218_v63  ;;  %v960_v37 = vadd.f32 %v959_v33, %v958_v60  ;;  %v355_v38 = vmul.f32 %v1504_v49, %v340_v62  ;;  %v1016_v43 = vadd.f32 %v1015_v34, %v1014_v61 }
 0x103   :  { %v961_v39 = vpop.f32.mrf.mxu0  ;;  %v1017_v40 = vpop.f32.mrf.mxu1  ;;  %v1079_v61 = vmov 0  }
 0x104   :  { %v341_v41 = vmax.f32 %v323_v36, 0.0  ;;  %v223_v42 = vadd.f32 %v960_v37, %v1498_v35  ;;  %v372_v44 = vsel %vm359_vm0, %v355_v38, 0.0  ;;  %1022 = vset.pattern.permute.xlu0 %v1079_v61  ;;  %1023 = vset.pattern.permute.xlu1 %v1079_v61 }
 0x105   :  { %v962_v45 = vpop.f32.mrf.mxu0  ;;  %v1018_v46 = vpop.f32.mrf.mxu1  ;;  %373 = vadd.xlane.f32.xlu0 %v372_v44 }
 0x106   :  { %v328_v47 = vadd.f32 %v1016_v43, %v223_v42  ;;  %v963_v48 = vadd.f32 %v962_v45, %v961_v39  ;;  %v356_v50 = vmul.f32 %v1504_v49, %v341_v41  ;;  %v1019_v53 = vadd.f32 %v1018_v46, %v1017_v40 }
 0x108   :  { %v342_v51 = vmax.f32 %v328_v47, 0.0  ;;  %v228_v52 = vadd.f32 %v963_v48, %v1498_v35  ;;  %v375_v54 = vsel %vm359_vm0, %v356_v50, 0.0  ;;  %v1529_v35 = vld [vmem:[#allocation2] ss:$0 sm:$0xff] }
 0x109   :  { %376 = vadd.xlane.f32.xlu1 %v375_v54 }
 0x10a   :  { %v333_v55 = vadd.f32 %v1019_v53, %v228_v52  ;;  %v357_v56 = vmul.f32 %v1504_v49, %v342_v51 }
 0x10c   :  { %v343_v57 = vmax.f32 %v333_v55, 0.0  ;;  %v378_v58 = vsel %vm359_vm0, %v357_v56, 0.0 }
 0x10d   :  { %379 = vadd.xlane.f32.xlu0 %v378_v58 }
 0x10e   :  { %v358_v59 = vmul.f32 %v1504_v49, %v343_v57 }
 0x110   :  { %v381_v60 = vsel %vm359_vm0, %v358_v59, 0.0 }
 0x111   :  { %382 = vadd.xlane.f32.xlu1 %v381_v60 }
 0x17e   :  { %v362_v62 = vpop.xlane.xlu0 %361 }
 0x17f   :  { %v391_v63 = vadd.f32 %v1529_v35, %v362_v62 }
 0x181   :  { %v400_v1 = vsel %vm399_vm1, %v391_v63, -inf }
 0x182   :  { %v401_v30 = vrot.slane %v400_v1, 4  ;;  %v365_v33 = vpop.xlane.xlu0 %364 }
 0x183   :  { %v392_v34 = vadd.f32 %v1529_v35, %v365_v33 }
 0x184   :  { %v402_v36 = vmax.f32 %v400_v1, %v401_v30 }
 0x185   :  { %v407_v49 = vsel %vm399_vm1, %v392_v34, -inf }
 0x186   :  { %v403_v37 = vrot.slane %v402_v36, 2  ;;  %v408_v38 = vrot.slane %v407_v49, 4  ;;  %v368_v39 = vpop.xlane.xlu1 %367 }
 0x187   :  { %v393_v40 = vadd.f32 %v1529_v35, %v368_v39 }
 0x188   :  { %v404_v41 = vmax.f32 %v402_v36, %v403_v37  ;;  %v409_v42 = vmax.f32 %v407_v49, %v408_v38 }
 0x189   :  { %v414_v43 = vsel %vm399_vm1, %v393_v40, -inf }
 0x18a   :  { %v405_v44 = vrot.slane %v404_v41, 1  ;;  %v410_v45 = vrot.slane %v409_v42, 2  ;;  %v415_v46 = vrot.slane %v414_v43, 4  ;;  %v371_v47 = vpop.xlane.xlu1 %370 }
 0x18b   :  { %v394_v48 = vadd.f32 %v1529_v35, %v371_v47 }
 0x18c   :  { %v406_v50 = vmax.f32 %v404_v41, %v405_v44  ;;  %v411_v51 = vmax.f32 %v409_v42, %v410_v45  ;;  %v416_v52 = vmax.f32 %v414_v43, %v415_v46 }
 0x18d   :  { %v421_v53 = vsel %vm399_vm1, %v394_v48, -inf }
 0x18e   :  { %v456_v54 = vsub.f32 %v391_v63, %v406_v50  ;;  %v412_v55 = vrot.slane %v411_v51, 1  ;;  %v417_v56 = vrot.slane %v416_v52, 2  ;;  %v422_v57 = vrot.slane %v421_v53, 4  ;;  %v374_v58 = vpop.xlane.xlu0 %373 }
 0x18f   :  { %v395_v59 = vadd.f32 %v1529_v35, %v374_v58 }
 0x190   :  { %v464_v60 = vmul.f32 1.442695, %v456_v54  ;;  %v413_v61 = vmax.f32 %v411_v51, %v412_v55  ;;  %v418_v62 = vmax.f32 %v416_v52, %v417_v56  ;;  %v423_v1 = vmax.f32 %v421_v53, %v422_v57 }
 0x191   :  { %v428_v30 = vsel %vm399_vm1, %v395_v59, -inf }
 0x192   :  { %1024 = vpow2.f32 %v464_v60  ;;  %v457_v33 = vsub.f32 %v392_v34, %v413_v61  ;;  %v419_v36 = vrot.slane %v418_v62, 1  ;;  %v424_v49 = vrot.slane %v423_v1, 2  ;;  %v377_v37 = vpop.xlane.xlu1 %376 }
 0x193   :  { %v429_v38 = vrot.slane %v428_v30, 4  ;;  %v396_v63 = vadd.f32 %v1529_v35, %v377_v37 }
 0x194   :  { %v466_v39 = vmul.f32 1.442695, %v457_v33  ;;  %v420_v41 = vmax.f32 %v418_v62, %v419_v36  ;;  %v425_v42 = vmax.f32 %v423_v1, %v424_v49 }
 0x195   :  { %v430_v43 = vmax.f32 %v428_v30, %v429_v38  ;;  %v435_v44 = vsel %vm399_vm1, %v396_v63, -inf }
 0x196   :  { %1026 = vpow2.f32 %v466_v39  ;;  %v458_v45 = vsub.f32 %v393_v40, %v420_v41  ;;  %v426_v46 = vrot.slane %v425_v42, 1  ;;  %v436_v47 = vrot.slane %v435_v44, 4  ;;  %v380_v50 = vpop.xlane.xlu0 %379 }
 0x197   :  { %v431_v51 = vrot.slane %v430_v43, 2  ;;  %v397_v34 = vadd.f32 %v1529_v35, %v380_v50 }
 0x198   :  { %v468_v52 = vmul.f32 1.442695, %v458_v45  ;;  %v427_v53 = vmax.f32 %v425_v42, %v426_v46  ;;  %v437_v54 = vmax.f32 %v435_v44, %v436_v47 }
 0x199   :  { %v432_v55 = vmax.f32 %v430_v43, %v431_v51  ;;  %v442_v56 = vsel %vm399_vm1, %v397_v34, -inf }
 0x19a   :  { %1028 = vpow2.f32 %v468_v52  ;;  %v459_v57 = vsub.f32 %v394_v48, %v427_v53  ;;  %v438_v58 = vrot.slane %v437_v54, 2  ;;  %v443_v60 = vrot.slane %v442_v56, 4  ;;  %v383_v61 = vpop.xlane.xlu1 %382 }
 0x19b   :  { %v433_v62 = vrot.slane %v432_v55, 1  ;;  %v398_v40 = vadd.f32 %v1529_v35, %v383_v61 }
 0x19c   :  { %v470_v1 = vmul.f32 1.442695, %v459_v57  ;;  %v439_v30 = vmax.f32 %v437_v54, %v438_v58  ;;  %v444_v33 = vmax.f32 %v442_v56, %v443_v60 }
 0x19d   :  { %v434_v36 = vmax.f32 %v432_v55, %v433_v62  ;;  %v449_v49 = vsel %vm399_vm1, %v398_v40, -inf }
 0x19e   :  { %1030 = vpow2.f32 %v470_v1  ;;  %v440_v37 = vrot.slane %v439_v30, 1  ;;  %v445_v38 = vrot.slane %v444_v33, 2  ;;  %v450_v39 = vrot.slane %v449_v49, 4 }
 0x19f   :  { %v1547_v41 = vpop.eup %1024  ;;  %v460_v42 = vsub.f32 %v395_v59, %v434_v36 }
 0x1a0   :  { %v480_v48 = vsel %vm399_vm1, %v1547_v41, 0.0  ;;  %v441_v43 = vmax.f32 %v439_v30, %v440_v37  ;;  %v446_v44 = vmax.f32 %v444_v33, %v445_v38  ;;  %v451_v45 = vmax.f32 %v449_v49, %v450_v39 }
 0x1a1   :  { %v481_v35 = vrot.slane %v480_v48, 4  ;;  %v472_v46 = vmul.f32 1.442695, %v460_v42 }
 0x1a2   :  { %v461_v47 = vsub.f32 %v396_v63, %v441_v43  ;;  %v447_v50 = vrot.slane %v446_v44, 1  ;;  %v452_v51 = vrot.slane %v451_v45, 2 }
 0x1a3   :  { %v1551_v52 = vpop.eup %1026  ;;  %v482_v53 = vadd.f32 %v481_v35, %v480_v48  ;;  %1032 = vpow2.f32 %v472_v46 }
 0x1a4   :  { %v487_v54 = vsel %vm399_vm1, %v1551_v52, 0.0  ;;  %v474_v55 = vmul.f32 1.442695, %v461_v47  ;;  %v448_v59 = vmax.f32 %v446_v44, %v447_v50  ;;  %v453_v56 = vmax.f32 %v451_v45, %v452_v51 }
 0x1a5   :  { %v483_v57 = vrot.slane %v482_v53, 2  ;;  %v488_v58 = vrot.slane %v487_v54, 4 }
 0x1a6   :  { %1034 = vpow2.f32 %v474_v55  ;;  %v462_v60 = vsub.f32 %v397_v34, %v448_v59  ;;  %v454_v61 = vrot.slane %v453_v56, 1 }
 0x1a7   :  { %v1555_v62 = vpop.eup %1028  ;;  %v489_v63 = vadd.f32 %v488_v58, %v487_v54  ;;  %v484_v1 = vadd.f32 %v483_v57, %v482_v53 }
 0x1a8   :  { %v494_v30 = vsel %vm399_vm1, %v1555_v62, 0.0  ;;  %v476_v33 = vmul.f32 1.442695, %v462_v60  ;;  %v455_v36 = vmax.f32 %v453_v56, %v454_v61 }
 0x1a9   :  { %v490_v49 = vrot.slane %v489_v63, 2  ;;  %v495_v37 = vrot.slane %v494_v30, 4  ;;  %v485_v38 = vrot.slane %v484_v1, 1 }
 0x1aa   :  { %1036 = vpow2.f32 %v476_v33  ;;  %v463_v39 = vsub.f32 %v398_v40, %v455_v36 }
 0x1ab   :  { %v1559_v42 = vpop.eup %1030  ;;  %v496_v48 = vadd.f32 %v495_v37, %v494_v30  ;;  %v486_v43 = vadd.f32 %v485_v38, %v484_v1  ;;  %v491_v34 = vadd.f32 %v490_v49, %v489_v63 }
 0x1ac   :  { %v501_v44 = vsel %vm399_vm1, %v1559_v42, 0.0  ;;  %v478_v45 = vmul.f32 1.442695, %v463_v39 }
 0x1ad   :  { %v497_v35 = vrot.slane %v496_v48, 2  ;;  %v502_v46 = vrot.slane %v501_v44, 4  ;;  %1038 = vrcp.f32 %v486_v43  ;;  %v492_v47 = vrot.slane %v491_v34, 1 }
 0x1ae   :  { %1040 = vpow2.f32 %v478_v45 }
 0x1af   :  { %v503_v50 = vadd.f32 %v502_v46, %v501_v44  ;;  %v493_v51 = vadd.f32 %v492_v47, %v491_v34  ;;  %v498_v53 = vadd.f32 %v497_v35, %v496_v48 }
 0x1b0   :  { %v1033_v54 = vpop.eup %1032 }
 0x1b1   :  { %v504_v55 = vrot.slane %v503_v50, 2  ;;  %v508_v40 = vsel %vm399_vm1, %v1033_v54, 0.0  ;;  %1042 = vrcp.f32 %v493_v51  ;;  %v499_v59 = vrot.slane %v498_v53, 1 }
 0x1b2   :  { %v509_v56 = vrot.slane %v508_v40, 4 }
 0x1b3   :  { %v1035_v57 = vpop.eup %1034  ;;  %v500_v58 = vadd.f32 %v499_v59, %v498_v53  ;;  %v505_v60 = vadd.f32 %v504_v55, %v503_v50 }
 0x1b4   :  { %v510_v61 = vadd.f32 %v509_v56, %v508_v40  ;;  %v515_v63 = vsel %vm399_vm1, %v1035_v57, 0.0 }
 0x1b5   :  { %v516_v1 = vrot.slane %v515_v63, 4  ;;  %1044 = vrcp.f32 %v500_v58  ;;  %v506_v30 = vrot.slane %v505_v60, 1 }
 0x1b6   :  { %v511_v33 = vrot.slane %v510_v61, 2 }
 0x1b7   :  { %v1037_v36 = vpop.eup %1036  ;;  %v517_v49 = vadd.f32 %v516_v1, %v515_v63  ;;  %v507_v37 = vadd.f32 %v506_v30, %v505_v60 }
 0x1b8   :  { %v522_v38 = vsel %vm399_vm1, %v1037_v36, 0.0  ;;  %v512_v39 = vadd.f32 %v511_v33, %v510_v61 }
 0x1b9   :  { %v518_v48 = vrot.slane %v517_v49, 2  ;;  %v523_v43 = vrot.slane %v522_v38, 4  ;;  %1046 = vrcp.f32 %v507_v37 }
 0x1ba   :  { %v1039_v34 = vpop.eup %1038  ;;  %v513_v44 = vrot.slane %v512_v39, 1 }
 0x1bb   :  { %v1041_v45 = vpop.eup %1040  ;;  %v524_v35 = vadd.f32 %v523_v43, %v522_v38  ;;  %v544_v46 = vmul.f32 %v1039_v34, %v1547_v41  ;;  %v519_v47 = vadd.f32 %v518_v48, %v517_v49 }
 0x1bc   :  { %v529_v50 = vsel %vm399_vm1, %v1041_v45, 0.0  ;;  %v514_v51 = vadd.f32 %v513_v44, %v512_v39 }
 0x1bd   :  { %v525_v53 = vrot.slane %v524_v35, 2  ;;  %v530_v55 = vrot.slane %v529_v50, 4  ;;  %554 = vperm.xlu0 %1022, %v544_v46   ;;  %v520_v40 = vrot.slane %v519_v47, 1 }
 0x1be   :  { %v1043_v59 = vpop.eup %1042  ;;  %1048 = vrcp.f32 %v514_v51 }
 0x1bf   :  { %v531_v56 = vadd.f32 %v530_v55, %v529_v50  ;;  %v545_v58 = vmul.f32 %v1043_v59, %v1551_v52  ;;  %v521_v60 = vadd.f32 %v520_v40, %v519_v47  ;;  %v526_v61 = vadd.f32 %v525_v53, %v524_v35 }
 0x1c1   :  { %v532_v63 = vrot.slane %v531_v56, 2  ;;  %559 = vperm.xlu1 %1023, %v545_v58   ;;  %1050 = vrcp.f32 %v521_v60  ;;  %v527_v1 = vrot.slane %v526_v61, 1 }
 0x1c2   :  { %v1045_v41 = vpop.eup %1044 }
 0x1c3   :  { %v546_v30 = vmul.f32 %v1045_v41, %v1555_v62  ;;  %v528_v33 = vadd.f32 %v527_v1, %v526_v61  ;;  %v533_v49 = vadd.f32 %v532_v63, %v531_v56 }
 0x1c5   :  { %564 = vperm.xlu1 %1023, %v546_v30   ;;  %1052 = vrcp.f32 %v528_v33  ;;  %v534_v37 = vrot.slane %v533_v49, 1 }
 0x1c6   :  { %v1047_v38 = vpop.eup %1046 }
 0x1c7   :  { %v547_v39 = vmul.f32 %v1047_v38, %v1559_v42  ;;  %v535_v48 = vadd.f32 %v534_v37, %v533_v49 }
 0x1c9   :  { %569 = vperm.xlu1 %1023, %v547_v39   ;;  %1054 = vrcp.f32 %v535_v48 }
 0x1cb   :  { %v1049_v52 = vpop.eup %1048 }
 0x1cc   :  { %v548_v43 = vmul.f32 %v1049_v52, %v1033_v54 }
 0x1ce   :  { %v1051_v34 = vpop.eup %1050  ;;  %574 = vperm.xlu1 %1023, %v548_v43  }
 0x1cf   :  { %v549_v44 = vmul.f32 %v1051_v34, %v1035_v57 }
 0x1d2   :  { %v1053_v35 = vpop.eup %1052  ;;  %579 = vperm.xlu1 %1023, %v549_v44  }
 0x1d3   :  { %v550_v46 = vmul.f32 %v1053_v35, %v1037_v36 }
 0x1d6   :  { %v1055_v62 = vpop.eup %1054  ;;  %584 = vperm.xlu1 %1023, %v550_v46  }
 0x1d7   :  { %v551_v47 = vmul.f32 %v1055_v62, %v1041_v45 }
 0x1da   :  { %589 = vperm.xlu1 %1023, %v551_v47  }
 0x238   :  { %v555_v50 = vpop.permute.xlu0 %554 }
 0x239   :  { %v592_v51 = vmul.f32 %v555_v50, %v1319_v3  ;;  %v593_v42 = vmul.f32 %v555_v50, %v1306_v0  ;;  %v594_v53 = vmul.f32 %v555_v50, %v1324_v4  ;;  %v595_v55 = vmul.f32 %v555_v50, %v1314_v2 }
 0x23b   :  { %v624_v54 = vrot.slane %v592_v51, 4  ;;  %v630_v40 = vrot.slane %v593_v42, 4  ;;  %v636_v59 = vrot.slane %v594_v53, 4  ;;  %v642_v57 = vrot.slane %v595_v55, 4 }
 0x23c   :  { %v560_v56 = vpop.permute.xlu1 %559 }
 0x23d   :  { %v625_v58 = vadd.f32 %v624_v54, %v592_v51  ;;  %v631_v36 = vadd.f32 %v630_v40, %v593_v42  ;;  %v637_v60 = vadd.f32 %v636_v59, %v594_v53  ;;  %v643_v61 = vadd.f32 %v642_v57, %v595_v55 }
 0x23e   :  { %v596_v45 = vmul.f32 %v560_v56, %v1345_v7  ;;  %v597_v63 = vmul.f32 %v560_v56, %v1330_v5  ;;  %v598_v3 = vmul.f32 %v560_v56, %v1350_v8  ;;  %v599_v0 = vmul.f32 %v560_v56, %v1335_v6 }
 0x23f   :  { %v626_v4 = vrot.slane %v625_v58, 2  ;;  %v632_v1 = vrot.slane %v631_v36, 2  ;;  %v638_v2 = vrot.slane %v637_v60, 2  ;;  %v644_v41 = vrot.slane %v643_v61, 2 }
 0x240   :  { %v648_v30 = vrot.slane %v596_v45, 4  ;;  %v654_v33 = vrot.slane %v597_v63, 4  ;;  %v660_v49 = vrot.slane %v598_v3, 4  ;;  %v666_v37 = vrot.slane %v599_v0, 4  ;;  %v565_v46 = vpop.permute.xlu1 %564 }
 0x241   :  { %v627_v38 = vadd.f32 %v626_v4, %v625_v58  ;;  %v633_v39 = vadd.f32 %v632_v1, %v631_v36  ;;  %v639_v48 = vadd.f32 %v638_v2, %v637_v60  ;;  %v645_v52 = vadd.f32 %v644_v41, %v643_v61 }
 0x242   :  { %v649_v43 = vadd.f32 %v648_v30, %v596_v45  ;;  %v655_v7 = vadd.f32 %v654_v33, %v597_v63  ;;  %v661_v34 = vadd.f32 %v660_v49, %v598_v3  ;;  %v667_v5 = vadd.f32 %v666_v37, %v599_v0 }
 0x243   :  { %v628_v62 = vrot.slane %v627_v38, 1  ;;  %v634_v47 = vrot.slane %v633_v39, 1  ;;  %v640_v50 = vrot.slane %v639_v48, 1  ;;  %v646_v51 = vrot.slane %v645_v52, 1 }
 0x244   :  { %v650_v44 = vrot.slane %v649_v43, 2  ;;  %v656_v8 = vrot.slane %v655_v7, 2  ;;  %v662_v35 = vrot.slane %v661_v34, 2  ;;  %v668_v6 = vrot.slane %v667_v5, 2 }
 0x245   :  { %v600_v40 = vmul.f32 %v565_v46, %v1369_v11  ;;  %v601_v59 = vmul.f32 %v565_v46, %v1355_v9  ;;  %v602_v57 = vmul.f32 %v565_v46, %v1374_v12  ;;  %v603_v56 = vmul.f32 %v565_v46, %v1360_v10  ;;  %v570_v12 = vpop.permute.xlu1 %569 }
 0x246   :  { %v651_v42 = vadd.f32 %v650_v44, %v649_v43  ;;  %v657_v53 = vadd.f32 %v656_v8, %v655_v7  ;;  %v663_v55 = vadd.f32 %v662_v35, %v661_v34  ;;  %v669_v54 = vadd.f32 %v668_v6, %v667_v5 }
 0x247   :  { %v672_v45 = vrot.slane %v600_v40, 4  ;;  %v678_v63 = vrot.slane %v601_v59, 4  ;;  %v684_v3 = vrot.slane %v602_v57, 4  ;;  %v690_v0 = vrot.slane %v603_v56, 4 }
 0x248   :  { %v652_v58 = vrot.slane %v651_v42, 1  ;;  %v658_v36 = vrot.slane %v657_v53, 1  ;;  %v664_v60 = vrot.slane %v663_v55, 1  ;;  %v670_v61 = vrot.slane %v669_v54, 1 }
 0x249   :  { %v629_v4 = vadd.f32 %v628_v62, %v627_v38  ;;  %v635_v1 = vadd.f32 %v634_v47, %v633_v39  ;;  %v641_v2 = vadd.f32 %v640_v50, %v639_v48  ;;  %v647_v41 = vadd.f32 %v646_v51, %v645_v52 }
 0x24a   :  { %v673_v11 = vadd.f32 %v672_v45, %v600_v40  ;;  %v679_v30 = vadd.f32 %v678_v63, %v601_v59  ;;  %v685_v9 = vadd.f32 %v684_v3, %v602_v57  ;;  %v691_v33 = vadd.f32 %v690_v0, %v603_v56  ;;  %v575_v45 = vpop.permute.xlu1 %574 }
 0x24b   :  { %v653_v49 = vadd.f32 %v652_v58, %v651_v42  ;;  %v659_v10 = vadd.f32 %v658_v36, %v657_v53  ;;  %v665_v37 = vadd.f32 %v664_v60, %v663_v55  ;;  %v671_v43 = vadd.f32 %v670_v61, %v669_v54 }
 0x24c   :  { %v674_v7 = vrot.slane %v673_v11, 2  ;;  %v680_v34 = vrot.slane %v679_v30, 2  ;;  %v686_v5 = vrot.slane %v685_v9, 2  ;;  %v692_v44 = vrot.slane %v691_v33, 2 }
 0x24d   :  { %v604_v8 = vmul.f32 %v570_v12, %v1393_v15  ;;  %v605_v38 = vmul.f32 %v570_v12, %v1379_v13  ;;  %v606_v39 = vmul.f32 %v570_v12, %v1398_v16  ;;  %v607_v48 = vmul.f32 %v570_v12, %v1384_v14 }
 0x24e   :  { %v675_v52 = vadd.f32 %v674_v7, %v673_v11  ;;  %v681_v35 = vadd.f32 %v680_v34, %v679_v30  ;;  %v687_v6 = vadd.f32 %v686_v5, %v685_v9  ;;  %v693_v46 = vadd.f32 %v692_v44, %v691_v33 }
 0x24f   :  { %v696_v62 = vrot.slane %v604_v8, 4  ;;  %v702_v47 = vrot.slane %v605_v38, 4  ;;  %v708_v50 = vrot.slane %v606_v39, 4  ;;  %v714_v51 = vrot.slane %v607_v48, 4 }
 0x250   :  { %v676_v42 = vrot.slane %v675_v52, 1  ;;  %v682_v53 = vrot.slane %v681_v35, 1  ;;  %v688_v55 = vrot.slane %v687_v6, 1  ;;  %v694_v54 = vrot.slane %v693_v46, 1 }
 0x251   :  { %v697_v15 = vadd.f32 %v696_v62, %v604_v8  ;;  %v703_v40 = vadd.f32 %v702_v47, %v605_v38  ;;  %v709_v13 = vadd.f32 %v708_v50, %v606_v39  ;;  %v715_v59 = vadd.f32 %v714_v51, %v607_v48 }
 0x252   :  { %v849_v16 = vsel %vm848_vm2, %v653_v49, %v629_v4  ;;  %v862_v14 = vsel %vm848_vm2, %v659_v10, %v635_v1  ;;  %v869_v57 = vsel %vm848_vm2, %v665_v37, %v641_v2  ;;  %v876_v56 = vsel %vm848_vm2, %v671_v43, %v647_v41 }
 0x253   :  { %v698_v58 = vrot.slane %v697_v15, 2  ;;  %v704_v36 = vrot.slane %v703_v40, 2  ;;  %v710_v60 = vrot.slane %v709_v13, 2  ;;  %v716_v61 = vrot.slane %v715_v59, 2 }
 0x254   :  { %v677_v63 = vadd.f32 %v676_v42, %v675_v52  ;;  %v683_v3 = vadd.f32 %v682_v53, %v681_v35  ;;  %v689_v0 = vadd.f32 %v688_v55, %v687_v6  ;;  %v695_v11 = vadd.f32 %v694_v54, %v693_v46  ;;  %v580_v52 = vpop.permute.xlu1 %579 }
 0x255   :  { %v699_v30 = vadd.f32 %v698_v58, %v697_v15  ;;  %v705_v9 = vadd.f32 %v704_v36, %v703_v40  ;;  %v711_v33 = vadd.f32 %v710_v60, %v709_v13  ;;  %v717_v4 = vadd.f32 %v716_v61, %v715_v59 }
 0x256   :  { %v608_v1 = vmul.f32 %v575_v45, %v1417_v19  ;;  %v609_v2 = vmul.f32 %v575_v45, %v1403_v17  ;;  %v610_v41 = vmul.f32 %v575_v45, %v1422_v20  ;;  %v611_v12 = vmul.f32 %v575_v45, %v1408_v18 }
 0x257   :  { %v700_v49 = vrot.slane %v699_v30, 1  ;;  %v706_v10 = vrot.slane %v705_v9, 1  ;;  %v712_v37 = vrot.slane %v711_v33, 1  ;;  %v718_v43 = vrot.slane %v717_v4, 1 }
 0x258   :  { %v720_v7 = vrot.slane %v608_v1, 4  ;;  %v726_v34 = vrot.slane %v609_v2, 4  ;;  %v732_v5 = vrot.slane %v610_v41, 4  ;;  %v738_v44 = vrot.slane %v611_v12, 4 }
 0x259   :  { %v851_v8 = vsel %vm850_vm3, %v677_v63, %v849_v16  ;;  %v863_v38 = vsel %vm850_vm3, %v683_v3, %v862_v14  ;;  %v870_v19 = vsel %vm850_vm3, %v689_v0, %v869_v57  ;;  %v877_v17 = vsel %vm850_vm3, %v695_v11, %v876_v56  ;;  %v585_v63 = vpop.permute.xlu1 %584 }
 0x25a   :  { %v721_v39 = vadd.f32 %v720_v7, %v608_v1  ;;  %v727_v20 = vadd.f32 %v726_v34, %v609_v2  ;;  %v733_v48 = vadd.f32 %v732_v5, %v610_v41  ;;  %v739_v18 = vadd.f32 %v738_v44, %v611_v12 }
 0x25b   :  { %v701_v35 = vadd.f32 %v700_v49, %v699_v30  ;;  %v707_v6 = vadd.f32 %v706_v10, %v705_v9  ;;  %v713_v46 = vadd.f32 %v712_v37, %v711_v33  ;;  %v719_v62 = vadd.f32 %v718_v43, %v717_v4 }
 0x25c   :  { %v722_v47 = vrot.slane %v721_v39, 2  ;;  %v728_v50 = vrot.slane %v727_v20, 2  ;;  %v734_v51 = vrot.slane %v733_v48, 2  ;;  %v740_v42 = vrot.slane %v739_v18, 2 }
 0x25d   :  { %v612_v53 = vmul.f32 %v580_v52, %v1441_v23  ;;  %v613_v55 = vmul.f32 %v580_v52, %v1427_v21  ;;  %v614_v54 = vmul.f32 %v580_v52, %v1446_v24  ;;  %v615_v15 = vmul.f32 %v580_v52, %v1432_v22 }
 0x25e   :  { %v723_v40 = vadd.f32 %v722_v47, %v721_v39  ;;  %v729_v13 = vadd.f32 %v728_v50, %v727_v20  ;;  %v735_v59 = vadd.f32 %v734_v51, %v733_v48  ;;  %v741_v16 = vadd.f32 %v740_v42, %v739_v18  ;;  %v590_v18 = vpop.permute.xlu1 %589 }
 0x25f   :  { %v744_v14 = vrot.slane %v612_v53, 4  ;;  %v750_v57 = vrot.slane %v613_v55, 4  ;;  %v756_v56 = vrot.slane %v614_v54, 4  ;;  %v762_v58 = vrot.slane %v615_v15, 4 }
 0x260   :  { %v1604_v36 = vsel %vm852_vm4, %v701_v35, %v851_v8  ;;  %v1607_v60 = vsel %vm852_vm4, %v707_v6, %v863_v38  ;;  %v1610_v21 = vsel %vm852_vm4, %v713_v46, %v870_v19  ;;  %v1613_v23 = vsel %vm852_vm4, %v719_v62, %v877_v17 }
 0x261   :  { %v745_v22 = vadd.f32 %v744_v14, %v612_v53  ;;  %v751_v24 = vadd.f32 %v750_v57, %v613_v55  ;;  %v757_v61 = vadd.f32 %v756_v56, %v614_v54  ;;  %v763_v45 = vadd.f32 %v762_v58, %v615_v15  ;;  %v1056_v53 = vld [vmem:[%s1648_s0 + $0xf8] sm:$0xff]  ;;  %s1080_s0 = smov [#allocation3]  }
 0x262   :  { %v724_v3 = vrot.slane %v723_v40, 1  ;;  %v730_v0 = vrot.slane %v729_v13, 1  ;;  %v736_v11 = vrot.slane %v735_v59, 1  ;;  %v742_v30 = vrot.slane %v741_v16, 1  ;;  %s897_s30 = sshll.u32 %s1080_s0, 4  ;;  %s898_s30 = int_to_ptr.vmem [resolvable:$true] %s897_s30 }
 0x263   :  { %v746_v9 = vrot.slane %v745_v22, 2  ;;  %v752_v33 = vrot.slane %v751_v24, 2  ;;  %v758_v4 = vrot.slane %v757_v61, 2  ;;  %v764_v1 = vrot.slane %v763_v45, 2  ;;  %s1057_s6 = scalar_lea.vmem %s898_s30, 512  ;;  %p1062_p1 = scmp.lt.s32.totalorder %s898_s30, %s898_s30 }
 0x264   :  { %v616_v2 = vmul.f32 %v585_v63, %v1465_v27  ;;  %v617_v41 = vmul.f32 %v585_v63, %v1451_v25  ;;  %v618_v12 = vmul.f32 %v585_v63, %v1470_v28  ;;  %v619_v49 = vmul.f32 %v585_v63, %v1456_v26  ;;  %p1058_p0 = scmp.ne.s32.totalorder %s898_s30, %s1057_s6  ;;  %p1063_p2 = scmp.lt.s32.totalorder %s1057_s6, %s1057_s6 }
 0x265   :  { %v747_v10 = vadd.f32 %v746_v9, %v745_v22  ;;  %v753_v37 = vadd.f32 %v752_v33, %v751_v24  ;;  %v759_v43 = vadd.f32 %v758_v4, %v757_v61  ;;  %v765_v7 = vadd.f32 %v764_v1, %v763_v45 }
 0x266   :  { %v768_v34 = vrot.slane %v616_v2, 4  ;;  %v774_v5 = vrot.slane %v617_v41, 4  ;;  %v780_v44 = vrot.slane %v618_v12, 4  ;;  %v786_v8 = vrot.slane %v619_v49, 4  ;;  %p1064_p3 = por %p1063_p2, %p1062_p1 }
 0x267   :  { %v725_v38 = vadd.f32 %v724_v3, %v723_v40  ;;  %v731_v19 = vadd.f32 %v730_v0, %v729_v13  ;;  %v737_v17 = vadd.f32 %v736_v11, %v735_v59  ;;  %v743_v39 = vadd.f32 %v742_v30, %v741_v16 }
 0x268   :  { %v769_v20 = vadd.f32 %v768_v34, %v616_v2  ;;  %v775_v27 = vadd.f32 %v774_v5, %v617_v41  ;;  %v781_v48 = vadd.f32 %v780_v44, %v618_v12  ;;  %v787_v25 = vadd.f32 %v786_v8, %v619_v49  ;;  %p1065_p4 = pnand %p1064_p3, %p1058_p0 }
 0x269   :  { %v748_v28 = vrot.slane %v747_v10, 1  ;;  %v754_v52 = vrot.slane %v753_v37, 1  ;;  %v760_v26 = vrot.slane %v759_v43, 1  ;;  %v766_v35 = vrot.slane %v765_v7, 1 }
 0x26a   :  { %v770_v6 = vrot.slane %v769_v20, 2  ;;  %v776_v46 = vrot.slane %v775_v27, 2  ;;  %v782_v62 = vrot.slane %v781_v48, 2  ;;  %v788_v47 = vrot.slane %v787_v25, 2 }
 0x26b   :  { %v620_v50 = vmul.f32 %v590_v18, %v1486_v31  ;;  %v621_v51 = vmul.f32 %v590_v18, %v1475_v29  ;;  %v622_v42 = vmul.f32 %v590_v18, %v1491_v32  ;;  %v623_v55 = vmul.f32 %v1056_v53, %v590_v18 }
 0x26c   :  { %v771_v54 = vadd.f32 %v770_v6, %v769_v20  ;;  %v777_v15 = vadd.f32 %v776_v46, %v775_v27  ;;  %v783_v40 = vadd.f32 %v782_v62, %v781_v48  ;;  %v789_v13 = vadd.f32 %v788_v47, %v787_v25 }
 0x26d   :  { %v792_v59 = vrot.slane %v620_v50, 4  ;;  %v798_v16 = vrot.slane %v621_v51, 4  ;;  %v804_v14 = vrot.slane %v622_v42, 4  ;;  %v810_v57 = vrot.slane %v623_v55, 4 }
 0x26e   :  { %v772_v31 = vrot.slane %v771_v54, 1  ;;  %v778_v56 = vrot.slane %v777_v15, 1  ;;  %v784_v29 = vrot.slane %v783_v40, 1  ;;  %v790_v58 = vrot.slane %v789_v13, 1 }
 0x26f   :  { %v793_v32 = vadd.f32 %v792_v59, %v620_v50  ;;  %v799_v22 = vadd.f32 %v798_v16, %v621_v51  ;;  %v805_v24 = vadd.f32 %v804_v14, %v622_v42  ;;  %v811_v61 = vadd.f32 %v810_v57, %v623_v55 }
 0x270   :  { %v749_v45 = vadd.f32 %v748_v28, %v747_v10  ;;  %v755_v63 = vadd.f32 %v754_v52, %v753_v37  ;;  %v761_v3 = vadd.f32 %v760_v26, %v759_v43  ;;  %v767_v0 = vadd.f32 %v766_v35, %v765_v7 }
 0x271   :  { %v794_v11 = vrot.slane %v793_v32, 2  ;;  %v800_v30 = vrot.slane %v799_v22, 2  ;;  %v806_v9 = vrot.slane %v805_v24, 2  ;;  %v812_v33 = vrot.slane %v811_v61, 2 }
 0x272   :  { %v773_v4 = vadd.f32 %v772_v31, %v771_v54  ;;  %v779_v1 = vadd.f32 %v778_v56, %v777_v15  ;;  %v785_v2 = vadd.f32 %v784_v29, %v783_v40  ;;  %v791_v41 = vadd.f32 %v790_v58, %v789_v13 }
 0x273   :  { %v795_v12 = vadd.f32 %v794_v11, %v793_v32  ;;  %v801_v49 = vadd.f32 %v800_v30, %v799_v22  ;;  %v807_v34 = vadd.f32 %v806_v9, %v805_v24  ;;  %v813_v5 = vadd.f32 %v812_v33, %v811_v61 }
 0x274   :  { %v855_v44 = vsel %vm854_vm5, %v725_v38, %v1604_v36  ;;  %v865_v10 = vsel %vm854_vm5, %v731_v19, %v1607_v60  ;;  %v872_v37 = vsel %vm854_vm5, %v737_v17, %v1610_v21  ;;  %v879_v43 = vsel %vm854_vm5, %v743_v39, %v1613_v23 }
 0x275   :  { %v796_v7 = vrot.slane %v795_v12, 1  ;;  %v802_v8 = vrot.slane %v801_v49, 1  ;;  %v808_v20 = vrot.slane %v807_v34, 1  ;;  %v814_v27 = vrot.slane %v813_v5, 1 }
 0x276   :  { %v857_v48 = vsel %vm856_vm6, %v749_v45, %v855_v44  ;;  %v866_v25 = vsel %vm856_vm6, %v755_v63, %v865_v10  ;;  %v873_v36 = vsel %vm856_vm6, %v761_v3, %v872_v37  ;;  %v880_v60 = vsel %vm856_vm6, %v767_v0, %v879_v43 }
 0x277   :  { %v797_v38 = vadd.f32 %v796_v7, %v795_v12  ;;  %v803_v19 = vadd.f32 %v802_v8, %v801_v49  ;;  %v809_v21 = vadd.f32 %v808_v20, %v807_v34  ;;  %v815_v17 = vadd.f32 %v814_v27, %v813_v5 }
 0x278   :  { %v859_v23 = vsel %vm858_vm7, %v773_v4, %v857_v48  ;;  %v867_v39 = vsel %vm858_vm7, %v779_v1, %v866_v25  ;;  %v874_v18 = vsel %vm858_vm7, %v785_v2, %v873_v36  ;;  %v881_v28 = vsel %vm858_vm7, %v791_v41, %v880_v60 }
 0x279   :  { %v861_v52 = vsel %vm860_vm8, %v797_v38, %v859_v23  ;;  %v868_v26 = vsel %vm860_vm8, %v803_v19, %v867_v39  ;;  %v875_v35 = vsel %vm860_vm8, %v809_v21, %v874_v18  ;;  %v882_v6 = vsel %vm860_vm8, %v815_v17, %v881_v28 }
 0x27a   :  { %887 = vst [vmem:[#allocation3] sm:$0xff] %v861_v52  ;;  %888 = vst [vmem:[#allocation3 + $0x8] sm:$0xff] %v868_v26 }
 0x27b   :  { %889 = vst [vmem:[#allocation3 + $0x10] sm:$0xff] %v875_v35  ;;  %890 = vst [vmem:[#allocation3 + $0x18] sm:$0xff] %v882_v6 }
 0x27c   :  { %1068 = shalt.err (!%p1065_p4)
}
 0x27d   :  { %900 = dma.vmem_to_hbm [thread:$0]  %s898_s30, 512, %s1653_s5, [#allocation4]  }
 0x27e   :  { %1077 = dma.done.wait [#allocation4], 512  }
 0x27f   :  { %1078 = vsyncadd [#allocation4], 4294966784 }
 0x280   :  { %904 = vsyncpa [#allocation4], 1 }

</bundles_post_ra>
